<compile_context>
chip_gen: v5e
topology: v5e:2x2
jax: 0.10.0
libtpu: 0.0.40
codegen_flags: <defaults>
</compile_context>

<pallas_src>
import jax
import jax.numpy as jnp
from jax.experimental import pallas as pl
from jax.experimental.pallas import tpu as pltpu


def _resblock_kernel(x_ref, fw1_ref, b1_ref, fw2_ref, b2_ref, o_ref,
                     xpad_ref, midpad_ref):
    """One (B, H, W*C) batch-tile per grid step.

    x_ref   : (B, H, WC)   f32 inputs, channels packed into lanes (WC = W*C)
    fw*_ref : (3*WC, WC)   bf16 fused-K block-banded conv weights
    b*_ref  : (1, WC)      f32 bias tiled across the W pixels of a row
    o_ref   : (B, H, WC)   f32 output
    xpad_ref, midpad_ref : (B, H+2, WC) bf16 VMEM scratch; rows 0 and H+1 are the
                           zero 'same'-padding rows in H.
    """
    B, H, WC = o_ref.shape
    BH = B * H

    # Refresh the zero H-padding border rows (scratch is uninitialized and
    # per-core; rows 1..H are fully overwritten below, so only the borders
    # need writing — a few tiny lane-dense stores per step).
    zrow = jnp.zeros((B, 1, WC), jnp.bfloat16)
    xpad_ref[:, 0:1, :] = zrow
    xpad_ref[:, H + 1:H + 2, :] = zrow
    midpad_ref[:, 0:1, :] = zrow
    midpad_ref[:, H + 1:H + 2, :] = zrow

    # Single bf16 cast of the conv1 input (identity path stays f32 in x_ref).
    xpad_ref[:, 1:H + 1, :] = x_ref[...].astype(jnp.bfloat16)

    def conv3x3(pad_ref, fw_ref, b_ref):
        # Fused-K LHS: the three dh taps (row-shifted views of the padded
        # buffer) laid side-by-side along lanes -> one (BH, 3*WC) x (3*WC, WC)
        # MXU matmul per conv with f32 accumulation.
        lhs = jnp.concatenate(
            [pad_ref[:, 0:H, :], pad_ref[:, 1:H + 1, :], pad_ref[:, 2:H + 2, :]],
            axis=-1).reshape(BH, 3 * WC)
        acc = jnp.dot(lhs, fw_ref[...], preferred_element_type=jnp.float32)
        return acc + b_ref[...]                              # (BH, WC) f32

    # ---- conv1 + bias + ReLU ----
    mid = jnp.maximum(conv3x3(xpad_ref, fw1_ref, b1_ref), 0.0)
    midpad_ref[:, 1:H + 1, :] = mid.reshape(B, H, WC).astype(jnp.bfloat16)

    # ---- conv2 + bias + residual (identity re-loaded in exact f32) ----
    out = conv3x3(midpad_ref, fw2_ref, b2_ref)               # (BH, WC) f32
    o_ref[...] = (x_ref[...] + out.reshape(B, H, WC)).astype(o_ref.dtype)


def _fused_banded_weights(w_oihw, W):
    """(C_out, C_in, 3, 3) torch-layout weight -> (3*W*C_in, W*C_out).

    FW[dh*W*Ci + (w+dw-1)*Ci + ci, w*Co + co] = w[co, ci, dh, dw].
    Out-of-range dw taps have no band (left/right zero 'same' padding); the dh
    axis is stacked along K so the kernel needs a single matmul per conv.
    """
    w_hwio = jnp.transpose(w_oihw, (2, 3, 1, 0)).astype(jnp.float32)  # (3,3,Ci,Co)
    blocks = []
    for dh in range(3):
        acc = 0.0
        for dw in range(3):
            shift = jnp.eye(W, k=1 - dw, dtype=jnp.float32)   # [w+dw-1, w] = 1
            acc = acc + jnp.kron(shift, w_hwio[dh, dw])
        blocks.append(acc)
    return jnp.concatenate(blocks, axis=0)                    # (3*W*Ci, W*Co)


def _pick_batch_tile(N, H, target_rows=256):
    """Largest B dividing N with (a) >= 2 grid steps when N >= 2 (v7x megacore)
    and (b) B*H <= target_rows (fills the MXU M dim without blowing VMEM)."""
    best = 1
    for b in range(1, N + 1):
        if N % b:
            continue
        if N >= 2 and N // b < 2:
            continue
        if b * H <= max(target_rows, H):
            best = b
    return best


def residual_block_nobn(x_nchw, w1, b1, w2, b2):
    """x_nchw: (N, C, H, W); w: (C_out, C_in, 3, 3) (PyTorch layout); b: (C,)."""
    N, C, H, W = x_nchw.shape
    WC = W * C
    B = _pick_batch_tile(N, H)
    assert N % B == 0

    # NCHW -> (N, H, W*C): one full image row (W pixels x C channels) per lane-row.
    # TODO(synk): keep the surrounding model NHWC end-to-end so these two wrapper
    # transposes (an extra HBM read+write pass of the activation each) disappear.
    x_rows = jnp.transpose(x_nchw, (0, 2, 3, 1)).reshape(N, H, WC)
    x_rows = x_rows.astype(jnp.float32)

    # Fused-K banded weights / tiled biases (in a real model: precompute once).
    fw1 = _fused_banded_weights(w1, W).astype(jnp.bfloat16)   # (3*WC, WC)
    fw2 = _fused_banded_weights(w2, W).astype(jnp.bfloat16)
    b1r = jnp.tile(b1.astype(jnp.float32), W).reshape(1, WC)
    b2r = jnp.tile(b2.astype(jnp.float32), W).reshape(1, WC)

    out_rows = pl.pallas_call(
        _resblock_kernel,
        out_shape=jax.ShapeDtypeStruct((N, H, WC), jnp.float32),
        grid_spec=pltpu.PrefetchScalarGridSpec(
            num_scalar_prefetch=0,
            grid=(N // B,),
            in_specs=[
                pl.BlockSpec((B, H, WC), lambda i: (i, 0, 0)),
                pl.BlockSpec((3 * WC, WC), lambda i: (0, 0)),
                pl.BlockSpec((1, WC), lambda i: (0, 0)),
                pl.BlockSpec((3 * WC, WC), lambda i: (0, 0)),
                pl.BlockSpec((1, WC), lambda i: (0, 0)),
            ],
            out_specs=pl.BlockSpec((B, H, WC), lambda i: (i, 0, 0)),
            scratch_shapes=[
                pltpu.VMEM((B, H + 2, WC), jnp.bfloat16),   # padded conv1 input
                pltpu.VMEM((B, H + 2, WC), jnp.bfloat16),   # padded conv2 input
            ],
        ),
        compiler_params=pltpu.CompilerParams(
            dimension_semantics=("parallel",)),
    )(x_rows, fw1, b1r, fw2, b2r)

    # (N, H, W*C) -> NCHW to match the PyTorch module's output convention.
    return jnp.transpose(out_rows.reshape(N, H, W, C), (0, 3, 1, 2))


def _ref_forward(x, w1, b1, w2, b2):
    """Pure-JAX reference matching F.conv2d semantics (NCHW / OIHW)."""
    dn = ("NCHW", "OIHW", "NCHW")
    out = jax.lax.conv_general_dilated(x, w1, (1, 1), "SAME",
                                       dimension_numbers=dn)
    out = out + b1[None, :, None, None]
    out = jnp.maximum(out, 0.0)
    out = jax.lax.conv_general_dilated(out, w2, (1, 1), "SAME",
                                       dimension_numbers=dn)
    out = out + b2[None, :, None, None]
    return x + out


def _init_conv_params(key, nf, scale=0.1):
    """Kaiming normal (fan_in, a=0 -> gain sqrt(2)) * scale.

    initialize_weights() zeroes the biases; we use small nonzero biases here so
    the bias path of the kernel is actually exercised by the check.
    """
    kw, kb = jax.random.split(key)
    fan_in = nf * 3 * 3
    std = (2.0 / fan_in) ** 0.5
    w = jax.random.normal(kw, (nf, nf, 3, 3), dtype=jnp.float32) * std * scale
    b = jax.random.normal(kb, (nf,), dtype=jnp.float32) * 0.01
    return w, b


if __name__ == "__main__":
    # Small shapes: W * NF = 128 -> exactly one 128-lane vreg row per image row;
    # N=4 so the batch-tiled grid has 2 steps of B=2 images each.
    N, NF, H, W = 4, 8, 16, 16

    key = jax.random.PRNGKey(0)
    kx, k1, k2 = jax.random.split(key, 3)

    x = jax.random.normal(kx, (N, NF, H, W), dtype=jnp.float32)
    w1, b1 = _init_conv_params(k1, NF, scale=0.1)
    w2, b2 = _init_conv_params(k2, NF, scale=0.1)

    out = residual_block_nobn(x, w1, b1, w2, b2)
    out = jax.block_until_ready(out)

    ref = _ref_forward(x, w1, b1, w2, b2)
    assert out.shape == (N, NF, H, W)
    # bf16 matmul operands (f32 accumulation, f32 identity path) -> loosened tol.
    assert jnp.allclose(out, ref, atol=1e-2, rtol=1e-2), "mismatch vs reference"

    print("KERNEL_OK")
</pallas_src>

<mosaic_0001>
module attributes {stable_mosaic.version = 11 : i64} {
  func.func @_resblock_kernel(%arg0: i32, %arg1: memref<2x16x128xf32, #tpu.memory_space<vmem>>, %arg2: memref<384x128xbf16, #tpu.memory_space<vmem>>, %arg3: memref<1x128xf32, #tpu.memory_space<vmem>>, %arg4: memref<384x128xbf16, #tpu.memory_space<vmem>>, %arg5: memref<1x128xf32, #tpu.memory_space<vmem>>, %arg6: memref<2x16x128xf32, #tpu.memory_space<vmem>>, %arg7: memref<2x18x128xbf16, #tpu.memory_space<vmem>>, %arg8: memref<2x18x128xbf16, #tpu.memory_space<vmem>>) attributes {dimension_semantics = [#tpu.dimension_semantics<parallel>], iteration_bounds = array<i64: 2>, scalar_prefetch = 0 : i64, scratch_operands = 2 : i64, tpu.core_type = #tpu.core_type<tc>, window_params = [{transform_indices = @transform_0, window_bounds = array<i64: 2, 16, 128>}, {pipeline_mode = #tpu.pipeline_mode<synchronous>, transform_indices = @transform_1, window_bounds = array<i64: 384, 128>}, {pipeline_mode = #tpu.pipeline_mode<synchronous>, transform_indices = @transform_2, window_bounds = array<i64: 1, 128>}, {pipeline_mode = #tpu.pipeline_mode<synchronous>, transform_indices = @transform_3, window_bounds = array<i64: 384, 128>}, {pipeline_mode = #tpu.pipeline_mode<synchronous>, transform_indices = @transform_4, window_bounds = array<i64: 1, 128>}, {transform_indices = @transform_5, window_bounds = array<i64: 2, 16, 128>}]} {
    %cst = arith.constant 0.000000e+00 : bf16
    %0 = vector.broadcast %cst : bf16 to vector<2x1x128xbf16>
    %c0 = arith.constant 0 : index
    %c0_0 = arith.constant 0 : index
    %c0_1 = arith.constant 0 : index
    %1 = vector.load %arg7[%c0, %c0_0, %c0_1] : memref<2x18x128xbf16, #tpu.memory_space<vmem>>, vector<2x1x128xbf16>
    tpu.vector_store %arg7[%c0, %c0_0, %c0_1], %0 {strides = array<i32>} : memref<2x18x128xbf16, #tpu.memory_space<vmem>>, vector<2x1x128xbf16>,
    %c0_2 = arith.constant 0 : index
    %c17 = arith.constant 17 : index
    %c0_3 = arith.constant 0 : index
    %2 = vector.load %arg7[%c0_2, %c17, %c0_3] : memref<2x18x128xbf16, #tpu.memory_space<vmem>>, vector<2x1x128xbf16>
    tpu.vector_store %arg7[%c0_2, %c17, %c0_3], %0 {strides = array<i32>} : memref<2x18x128xbf16, #tpu.memory_space<vmem>>, vector<2x1x128xbf16>,
    %c0_4 = arith.constant 0 : index
    %c0_5 = arith.constant 0 : index
    %c0_6 = arith.constant 0 : index
    %3 = vector.load %arg8[%c0_4, %c0_5, %c0_6] : memref<2x18x128xbf16, #tpu.memory_space<vmem>>, vector<2x1x128xbf16>
    tpu.vector_store %arg8[%c0_4, %c0_5, %c0_6], %0 {strides = array<i32>} : memref<2x18x128xbf16, #tpu.memory_space<vmem>>, vector<2x1x128xbf16>,
    %c0_7 = arith.constant 0 : index
    %c17_8 = arith.constant 17 : index
    %c0_9 = arith.constant 0 : index
    %4 = vector.load %arg8[%c0_7, %c17_8, %c0_9] : memref<2x18x128xbf16, #tpu.memory_space<vmem>>, vector<2x1x128xbf16>
    tpu.vector_store %arg8[%c0_7, %c17_8, %c0_9], %0 {strides = array<i32>} : memref<2x18x128xbf16, #tpu.memory_space<vmem>>, vector<2x1x128xbf16>,
    %c0_10 = arith.constant 0 : index
    %c0_11 = arith.constant 0 : index
    %c0_12 = arith.constant 0 : index
    %5 = vector.load %arg1[%c0_10, %c0_11, %c0_12] : memref<2x16x128xf32, #tpu.memory_space<vmem>>, vector<2x16x128xf32>
    %6 = arith.truncf %5 : vector<2x16x128xf32> to vector<2x16x128xbf16>
    %c0_13 = arith.constant 0 : index
    %c1 = arith.constant 1 : index
    %c0_14 = arith.constant 0 : index
    %7 = vector.load %arg7[%c0_13, %c1, %c0_14] : memref<2x18x128xbf16, #tpu.memory_space<vmem>>, vector<2x16x128xbf16>
    tpu.vector_store %arg7[%c0_13, %c1, %c0_14], %6 {strides = array<i32>} : memref<2x18x128xbf16, #tpu.memory_space<vmem>>, vector<2x16x128xbf16>,
    %c0_15 = arith.constant 0 : index
    %c0_16 = arith.constant 0 : index
    %c0_17 = arith.constant 0 : index
    %8 = vector.load %arg7[%c0_15, %c0_16, %c0_17] : memref<2x18x128xbf16, #tpu.memory_space<vmem>>, vector<2x16x128xbf16>
    %c0_18 = arith.constant 0 : index
    %c1_19 = arith.constant 1 : index
    %c0_20 = arith.constant 0 : index
    %9 = vector.load %arg7[%c0_18, %c1_19, %c0_20] : memref<2x18x128xbf16, #tpu.memory_space<vmem>>, vector<2x16x128xbf16>
    %c0_21 = arith.constant 0 : index
    %c2 = arith.constant 2 : index
    %c0_22 = arith.constant 0 : index
    %10 = vector.load %arg7[%c0_21, %c2, %c0_22] : memref<2x18x128xbf16, #tpu.memory_space<vmem>>, vector<2x16x128xbf16>
    %11 = tpu.concatenate %8, %9, %10 in 2 : vector<2x16x128xbf16>, vector<2x16x128xbf16>, vector<2x16x128xbf16> -> vector<2x16x384xbf16>
    %12 = vector.shape_cast %11 : vector<2x16x384xbf16> to vector<32x384xbf16>
    %c0_23 = arith.constant 0 : index
    %c0_24 = arith.constant 0 : index
    %13 = vector.load %arg2[%c0_23, %c0_24] : memref<384x128xbf16, #tpu.memory_space<vmem>>, vector<384x128xbf16>
    %cst_25 = arith.constant dense<0.000000e+00> : vector<32x128xf32>
    %14 = tpu.matmul %12, %13, %cst_25 {dimension_numbers = #tpu.dot_dimension_numbers<[1], [0], [0], [1], [0, 0, 1, 1], [], []>} : vector<32x384xbf16>, vector<384x128xbf16>, vector<32x128xf32> -> vector<32x128xf32>
    %c0_26 = arith.constant 0 : index
    %c0_27 = arith.constant 0 : index
    %15 = vector.load %arg3[%c0_26, %c0_27] : memref<1x128xf32, #tpu.memory_space<vmem>>, vector<1x128xf32>
    %16 = vector.broadcast %15 : vector<1x128xf32> to vector<32x128xf32>
    %17 = arith.addf %14, %16 : vector<32x128xf32>
    %cst_28 = arith.constant 0.000000e+00 : f32
    %18 = vector.broadcast %cst_28 : f32 to vector<32x128xf32>
    %19 = arith.maximumf %17, %18 : vector<32x128xf32>
    %20 = vector.shape_cast %19 : vector<32x128xf32> to vector<2x16x128xf32>
    %21 = arith.truncf %20 : vector<2x16x128xf32> to vector<2x16x128xbf16>
    %c0_29 = arith.constant 0 : index
    %c1_30 = arith.constant 1 : index
    %c0_31 = arith.constant 0 : index
    %22 = vector.load %arg8[%c0_29, %c1_30, %c0_31] : memref<2x18x128xbf16, #tpu.memory_space<vmem>>, vector<2x16x128xbf16>
    tpu.vector_store %arg8[%c0_29, %c1_30, %c0_31], %21 {strides = array<i32>} : memref<2x18x128xbf16, #tpu.memory_space<vmem>>, vector<2x16x128xbf16>,
    %c0_32 = arith.constant 0 : index
    %c0_33 = arith.constant 0 : index
    %c0_34 = arith.constant 0 : index
    %23 = vector.load %arg8[%c0_32, %c0_33, %c0_34] : memref<2x18x128xbf16, #tpu.memory_space<vmem>>, vector<2x16x128xbf16>
    %c0_35 = arith.constant 0 : index
    %c1_36 = arith.constant 1 : index
    %c0_37 = arith.constant 0 : index
    %24 = vector.load %arg8[%c0_35, %c1_36, %c0_37] : memref<2x18x128xbf16, #tpu.memory_space<vmem>>, vector<2x16x128xbf16>
    %c0_38 = arith.constant 0 : index
    %c2_39 = arith.constant 2 : index
    %c0_40 = arith.constant 0 : index
    %25 = vector.load %arg8[%c0_38, %c2_39, %c0_40] : memref<2x18x128xbf16, #tpu.memory_space<vmem>>, vector<2x16x128xbf16>
    %26 = tpu.concatenate %23, %24, %25 in 2 : vector<2x16x128xbf16>, vector<2x16x128xbf16>, vector<2x16x128xbf16> -> vector<2x16x384xbf16>
    %27 = vector.shape_cast %26 : vector<2x16x384xbf16> to vector<32x384xbf16>
    %c0_41 = arith.constant 0 : index
    %c0_42 = arith.constant 0 : index
    %28 = vector.load %arg4[%c0_41, %c0_42] : memref<384x128xbf16, #tpu.memory_space<vmem>>, vector<384x128xbf16>
    %cst_43 = arith.constant dense<0.000000e+00> : vector<32x128xf32>
    %29 = tpu.matmul %27, %28, %cst_43 {dimension_numbers = #tpu.dot_dimension_numbers<[1], [0], [0], [1], [0, 0, 1, 1], [], []>} : vector<32x384xbf16>, vector<384x128xbf16>, vector<32x128xf32> -> vector<32x128xf32>
    %c0_44 = arith.constant 0 : index
    %c0_45 = arith.constant 0 : index
    %30 = vector.load %arg5[%c0_44, %c0_45] : memref<1x128xf32, #tpu.memory_space<vmem>>, vector<1x128xf32>
    %31 = vector.broadcast %30 : vector<1x128xf32> to vector<32x128xf32>
    %32 = arith.addf %29, %31 : vector<32x128xf32>
    %c0_46 = arith.constant 0 : index
    %c0_47 = arith.constant 0 : index
    %c0_48 = arith.constant 0 : index
    %33 = vector.load %arg1[%c0_46, %c0_47, %c0_48] : memref<2x16x128xf32, #tpu.memory_space<vmem>>, vector<2x16x128xf32>
    %34 = vector.shape_cast %32 : vector<32x128xf32> to vector<2x16x128xf32>
    %35 = arith.addf %33, %34 : vector<2x16x128xf32>
    %c0_49 = arith.constant 0 : index
    %c0_50 = arith.constant 0 : index
    %c0_51 = arith.constant 0 : index
    %36 = vector.load %arg6[%c0_49, %c0_50, %c0_51] : memref<2x16x128xf32, #tpu.memory_space<vmem>>, vector<2x16x128xf32>
    tpu.vector_store %arg6[%c0_49, %c0_50, %c0_51], %35 {strides = array<i32>} : memref<2x16x128xf32, #tpu.memory_space<vmem>>, vector<2x16x128xf32>,
    return
  }
  func.func @transform_0(%arg0: i32) -> (i32, i32, i32) {
    %c0_i32 = arith.constant 0 : i32
    %c0_i32_0 = arith.constant 0 : i32
    %c0_i32_1 = arith.constant 0 : i32
    return %arg0, %c0_i32, %c0_i32_0 : i32, i32, i32
  }
  func.func @transform_1(%arg0: i32) -> (i32, i32) {
    %c0_i32 = arith.constant 0 : i32
    %c0_i32_0 = arith.constant 0 : i32
    %c0_i32_1 = arith.constant 0 : i32
    return %c0_i32, %c0_i32_0 : i32, i32
  }
  func.func @transform_2(%arg0: i32) -> (i32, i32) {
    %c0_i32 = arith.constant 0 : i32
    %c0_i32_0 = arith.constant 0 : i32
    %c0_i32_1 = arith.constant 0 : i32
    return %c0_i32, %c0_i32_0 : i32, i32
  }
  func.func @transform_3(%arg0: i32) -> (i32, i32) {
    %c0_i32 = arith.constant 0 : i32
    %c0_i32_0 = arith.constant 0 : i32
    %c0_i32_1 = arith.constant 0 : i32
    return %c0_i32, %c0_i32_0 : i32, i32
  }
  func.func @transform_4(%arg0: i32) -> (i32, i32) {
    %c0_i32 = arith.constant 0 : i32
    %c0_i32_0 = arith.constant 0 : i32
    %c0_i32_1 = arith.constant 0 : i32
    return %c0_i32, %c0_i32_0 : i32, i32
  }
  func.func @transform_5(%arg0: i32) -> (i32, i32, i32) {
    %c0_i32 = arith.constant 0 : i32
    %c0_i32_0 = arith.constant 0 : i32
    %c0_i32_1 = arith.constant 0 : i32
    return %arg0, %c0_i32, %c0_i32_0 : i32, i32, i32
  }
}

</mosaic_0001>

<bundles_post_ra>
// kernel: tpu_custom_call.1
= control target key start
LH: loop header
LB: loop body
LE: loop exit
PB: predicated region body
PF: predicated region fallthrough
CT: control target
= control target key end

     0   :  { %10 = vsyncpa [#allocation5], 0  ;;  %s2028_s0 = inlined_call_operand.hbm [shape: f32[4,16,128], index: 0, kind: input, shape index: {}]   ;;  %s2029_s1 = inlined_call_operand.hbm [shape: bf16[384,128], index: 1, kind: input, shape index: {}]   ;;  %s2030_s2 = inlined_call_operand.vmem [shape: f32[1,128], index: 2, kind: input, shape index: {}]   ;;  %s2031_s3 = inlined_call_operand.hbm [shape: bf16[384,128], index: 3, kind: input, shape index: {}]   ;;  %s2032_s4 = inlined_call_operand.vmem [shape: f32[1,128], index: 4, kind: input, shape index: {}]   ;;  %s2033_s5 = inlined_call_operand.hbm [shape: f32[4,16,128], index: 5, kind: output, shape index: {}]  }
   0x1   :  { %12 = vsyncpa [#allocation5 + $0x1], 0 }
   0x2   :  { %13 = vsyncpa [#allocation8], 0 }
   0x3   :  { %14 = vsyncpa [#allocation6], 0 }
   0x4   :  { %16 = vsyncpa [#allocation6 + $0x1], 0  ;;  %s1775_s18 = smov 0   ;;  %s1777_s19 = smov 0  }
   0x5   :  { %s1779_s20 = smov 0   ;;  %s1781_s21 = smov 0  }
   0x6 LB: > { %s1796_s22 = sadd.s32 4294967295, %s1735_s21   ;;  %s1200_s23 = sadd.s32 4294967294, %s1735_s21   ;;  %s1735_s21 = sphi %s1781_s21, %s2051_s21   ;;  %s1731_s20 = sphi %s1779_s20, %s2050_s20   ;;  %s1727_s19 = sphi %s1777_s19, %s2049_s19   ;;  %s1723_s18 = sphi %s1775_s18, %s2048_s18  }
   0x7   : > { %p42_p0 = scmp.ne.s32.totalorder %s1727_s19, %s1723_s18  ;;  %p43_p1 = scmp.eq.s32.totalorder %s1796_s22, 0 }
   0x8   : > { %p150_p2 = scmp.eq.s32.totalorder %s1796_s22, 1  ;;  %p156_p3 = scmp.eq.s32.totalorder %s1200_s23, 1 }
   0x9   : > { %p1805_p4 = por %p43_p1, %p42_p0  ;;  %p1201_p5 = scmp.ge.s32.totalorder %s1735_s21, 1 }
   0xa   : > { %p1810_p6 = por %p156_p3, %p42_p0  ;;  %p163_p7 = scmp.lt.s32.totalorder %s1735_s21, 3 }
   0xb   : > { %s174_s28 = sshll.u32 %s2029_s1, 4  ;;  %s1737_s30 = smov [#allocation7]   ;;  %s175_s28 = int_to_ptr.hbm [resolvable:$true] %s174_s28 }
   0xc   : > { %p1818_p8 = pnand %p1201_p5, %p163_p7  ;;  %s176_s6 = sshll.u32 %s1737_s30, 4  ;;  %s177_s6 = int_to_ptr.vmem [resolvable:$true] %s176_s6 }
   0xd   : > { %s191_s9 = sshll.u32 %s2031_s3, 4  ;;  %s1738_s10 = smov 64   ;;  %s192_s9 = int_to_ptr.hbm [resolvable:$true] %s191_s9 }
   0xe   : > { %p1506_p9 = pneg %p1818_p8  ;;  %s1739_s11 = smov 4  }
   0xf   : > { %s1740_s12 = smov [#allocation9]   ;;  %s1831_s14 = sadd.s32 1, %s1735_s21  }
  0x10   : > { %p1507_p10 = pnand %p1506_p9, %p43_p1  ;;  %s193_s13 = sshll.u32 %s1740_s12, 4  ;;  %s194_s13 = int_to_ptr.vmem [resolvable:$true] %s193_s13 }
  0x11   : > { %s29_s15 = sadd.s32 1, %s1731_s20  ;;  %s26_s16 = ssub.s32 %s1735_s21, %s1831_s14 }
  0x12   : > { %1509 = dma.hbm_to_vmem [thread:$0]  (!%p1507_p10), %s175_s28, 3072, %s177_s6, [#allocation8], %s1738_s10, %s1738_s10, %s1739_s11  }
  0x13   : > { %1512 = dma.hbm_to_vmem [thread:$0]  (!%p1507_p10), %s192_s9, 3072, %s194_s13, [#allocation8], %s1738_s10, %s1738_s10, %s1739_s11  }
  0x14   : > { %p36_p12 = scmp.ne.s32.totalorder %s1731_s20, %s1727_s19  ;;  %p27_p13 = scmp.eq.s32.totalorder %s26_s16, 0 }
  0x15   : > { %p37_p0 = scmp.eq.s32.totalorder %s1735_s21, 0  ;;  %p1523_p5 = scmp.lt.s32.totalorder %s1735_s21, 2 }
  0x16   : > { %p1841_p3 = por %p150_p2, %p36_p12  ;;  %s210_s26 = sand.u32 1, %s1731_s20  }
  0x17   : > { %s1847_s23 = scalar_select %p27_p13, %s1731_s20, %s29_s15  }
  0x18   : > { %p38_p7 = por %p37_p0, %p36_p12  ;;  %s1205_s27 = sshll.u32 %s210_s26, 5 }
  0x19   : > { %s1413_s28 = sshll.u32 %s1735_s21, 5  ;;  %s214_s8 = scalar_lea.vmem [#allocation4], %s1205_s27 }
  0x1a   : > { %s220_s7 = scalar_lea.hbm %s2028_s0, %s1413_s28  ;;  %s223_s9 = sshll.u32 %s214_s8, 4  ;;  %s224_s9 = int_to_ptr.vmem [resolvable:$true] %s223_s9 }
  0x1b   : > { %s221_s10 = sshll.u32 %s220_s7, 4  ;;  %p1854_p2 = pnand %p1523_p5, %p38_p7  ;;  %s222_s10 = int_to_ptr.hbm [resolvable:$true] %s221_s10 }
  0x1c   : > { %s211_s12 = scalar_lea.sflag [#allocation5], %s210_s26  ;;  %s1635_s13 = sshra.s32 %s222_s10, 4  ;;  %s1636_s13 = int_to_ptr.hbm [resolvable:$true] %s1635_s13 }
  0x1d   : > { %s1637_s15 = scalar_lea.hbm %s1636_s13, 32  ;;  %p1639_p10 = pneg %p1854_p2 }
  0x1e   : > { %p1638_p9 = scmp.ne.s32.totalorder %s1636_s13, %s1637_s15  ;;  %s1642_s28 = scalar_lea.hbm %s2028_s0, 64 }
  0x1f   : > { %p1643_p0 = scmp.lt.s32.totalorder %s1636_s13, %s2028_s0  ;;  %p1644_p5 = scmp.lt.s32.totalorder %s1642_s28, %s1637_s15 }
  0x20   : > { %p1640_p12 = pnand %p1639_p10, %p1638_p9 }
  0x21   : > { %p1645_p7 = por %p1644_p5, %p1643_p0 }
  0x22   : > { %p1641_p13 = pneg %p1640_p12 }
  0x24   : > { %p1646_p11 = pnand %p1645_p7, %p1641_p13 }
  0x26   : > { %1649 = shalt.err (!%p1646_p11)
}
  0x27   : > { %s1741_s26 = smov 128   ;;  %s1742_s7 = smov 8  }
  0x28   : > { %1516 = dma.hbm_to_vmem [thread:$0]  (!%p1854_p2), %s222_s10, 512, %s224_s9, %s211_s12, %s1741_s26, %s1741_s26, %s1742_s7  }
  0x29   : > { %235 = sbr.rel (%p1818_p8) target bundleno = 424 (0x1a8), region = 40  ;;  %s1871_s8 = sand.u32 (!%p1818_p8), 1, %s1727_s19  }
  0x2a   : > { %s1210_s13 = sshll.u32 (!%p1818_p8), %s1871_s8, 5  ;;  %s238_s15 = scalar_lea.sflag (!%p1818_p8), [#allocation5], %s1871_s8 }
  0x2b   : > { %s1877_s16 = scalar_lea.vmem (!%p1818_p8), [#allocation4], %s1210_s13 }
  0x2e   : > { %1710 = dma.done.wait (%p1805_p4), %s238_s15, 512  }
  0x2f   : > { %1712 = vsyncadd (%p1805_p4), %s238_s15, 4294966784 }
  0x30   : > { %1714 = dma.done.wait (%p43_p1), [#allocation8], 6144  }
  0x31   : > { %1716 = vsyncadd (%p43_p1), [#allocation8], 4294961152  ;;  %v1421_v0 = vld [vmem:[#allocation7 + $0x38] sm:$0xff]  ;;  %v1420_v3 = vld [vmem:[#allocation7 + $0x30] sm:$0xff]  ;;  %vm283_vm0 = vsmask.f32 256 }
  0x32   : > { %v1429_v1 = vld [vmem:[#allocation7 + $0x78] sm:$0xff]  ;;  %641 = vmatpush.bf16.msra.mxu0 %v1421_v0  ;;  %v1428_v4 = vld [vmem:[#allocation7 + $0x70] sm:$0xff]  ;;  %vm282_vm1 = vcmask 1040384   ;;  %vm291_vm2 = vsmask.f32 7938  ;;  %v1419_v6 = vld [vmem:[#allocation7 + $0x28] sm:$0xff] }
  0x33   : > { %v1437_v2 = vld [vmem:[#allocation7 + $0xb8] sm:$0xff]  ;;  %660 = vmatpush.bf16.msra.mxu1 %v1429_v1  ;;  %v1436_v5 = vld [vmem:[#allocation7 + $0xb0] sm:$0xff]  ;;  %v1427_v7 = vld [vmem:[#allocation7 + $0x68] sm:$0xff]  ;;  %vm361_vm5 = vcmask 1043456   ;;  %vm319_vm6 = vsmask.f32 4368 }
  0x34   : > { %679 = vmatpush.bf16.msra.mxu2 %v1437_v2  ;;  %vm1888_vm3 = vmand %vm282_vm1, %vm283_vm0  ;;  %v1435_v9 = vld [vmem:[#allocation7 + $0xa8] sm:$0xff]  ;;  %v1418_v11 = vld [vmem:[#allocation7 + $0x20] sm:$0xff]  ;;  %vm436_vm9 = vcmask 1046528   ;;  %vm403_vm10 = vsmask.f32 7424  ;;  %s278_s11 = scalar_lea.vmem [#allocation10], %s1210_s13 }
  0x35   : > { %vm1893_vm4 = vmand %vm282_vm1, %vm291_vm2  ;;  %v1426_v12 = vld [vmem:[#allocation7 + $0x60] sm:$0xff]  ;;  %v285_v13 = vld [vmem:[#allocation2] sm:$0x1]  ;;  %s1463_s12 = sshll.u32 %s1796_s22, 5  ;;  %s1105_s6 = sshll.u32 %s278_s11, 4  ;;  %s1106_s6 = int_to_ptr.vmem [resolvable:$true] %s1105_s6 }
  0x36   : > { %642 = vmatpush.bf16.msra.mxu0 %v1420_v3  ;;  %v1898_v14 = vld [vmem:[%s1877_s16] sm:$0xff]  ;;  %v1901_v15 = vld [vmem:[%s1877_s16 + $0x8] sm:$0xff]  ;;  %v286_v16 = vsel %vm1888_vm3, 0, %v285_v13  ;;  %v293_v19 = vld [vmem:[#allocation2 + $0x8] sm:$0x1]  ;;  %s1104_s30 = scalar_lea.hbm %s2033_s5, %s1463_s12  ;;  %s1092_s22 = scalar_lea.sflag [#allocation6], %s1871_s8 }
  0x37   : > { %661 = vmatpush.bf16.msra.mxu1 %v1428_v4  ;;  %v315_v17 = vpack.c.bf16 %v1898_v14, %v1898_v14  ;;  %v316_v18 = vpack.c.bf16 %v1901_v15, %v1901_v15  ;;  %v288_v20 = vld [vmem:[#allocation2 + $0xc] sm:$0x1]  ;;  %v1910_v21 = vld [vmem:[%s1877_s16 + $0x10] sm:$0xff]  ;;  %v1434_v22 = vld [vmem:[#allocation7 + $0xa0] sm:$0xff]  ;;  %287 = vst [vmem:[#allocation2] sm:$0x1] %v286_v16 }
  0x38   : > { %680 = vmatpush.bf16.msra.mxu2 %v1436_v5  ;;  %v294_v23 = vsel %vm1893_vm4, 0, %v293_v19  ;;  %v289_v24 = vsel %vm1888_vm3, 0, %v288_v20  ;;  %v1917_v25 = vld [vmem:[%s1877_s16 + $0x18] sm:$0xff]  ;;  %v317_v26 = vpack.c.bf16 %v1910_v21, %v1910_v21  ;;  %v296_v34 = vld [vmem:[#allocation2 + $0x14] sm:$0x1]  ;;  %vm1927_vm7 = vmor %vm283_vm0, %vm319_vm6  ;;  %s1107_s26 = sshll.u32 %s1104_s30, 4  ;;  %s1108_s26 = int_to_ptr.hbm [resolvable:$true] %s1107_s26 }
  0x39   : > { %v322_v27 = vshrl.u32 %v315_v17, 16  ;;  %v325_v28 = vshll.u32 %v315_v17, 16  ;;  %v330_v29 = vshrl.u32 %v316_v18, 16  ;;  %v333_v30 = vshll.u32 %v316_v18, 16  ;;  %295 = vst [vmem:[#allocation2 + $0x8] sm:$0x1] %v294_v23  ;;  %vm1933_vm8 = vmand %vm361_vm5, %vm291_vm2 }
  0x3a   : > { %643 = vmatpush.bf16.msra.mxu0 %v1419_v6  ;;  %290 = vst [vmem:[#allocation2 + $0xc] sm:$0x1] %v289_v24  ;;  %v318_v31 = vpack.c.bf16 %v1917_v25, %v1917_v25  ;;  %v339_v32 = vshrl.u32 %v317_v26, 16  ;;  %v342_v33 = vshll.u32 %v317_v26, 16  ;;  %v1417_v35 = vld [vmem:[#allocation7 + $0x18] sm:$0xff]  ;;  %v297_v38 = vsel %vm1893_vm4, 0, %v296_v34 }
  0x3b   : > { %662 = vmatpush.bf16.msra.mxu1 %v1427_v7  ;;  %v324_v36 = vrot.slane %v322_v27, 7  ;;  %v332_v37 = vrot.slane %v330_v29, 7  ;;  %v1425_v39 = vld [vmem:[#allocation7 + $0x58] sm:$0xff]  ;;  %298 = vst [vmem:[#allocation2 + $0x14] sm:$0x1] %v297_v38  ;;  %v1416_v53 = vld [vmem:[#allocation7 + $0x10] sm:$0xff] }
  0x3c   : > { %681 = vmatpush.bf16.msra.mxu2 %v1435_v9  ;;  %v341_v41 = vrot.slane %v339_v32, 7  ;;  %v347_v42 = vshrl.u32 %v318_v31, 16  ;;  %v350_v43 = vshll.u32 %v318_v31, 16  ;;  %v1433_v44 = vld [vmem:[#allocation7 + $0x98] sm:$0xff]  ;;  %v1424_v56 = vld [vmem:[#allocation7 + $0x50] sm:$0xff]  ;;  %v1415_v3 = vld [vmem:[#allocation7 + $0x8] sm:$0xff] }
  0x3d   : > { %v327_v45 = vor.u32 %v325_v28, %v324_v36  ;;  %v328_v46 = vrot.slane %v324_v36, 4  ;;  %v335_v47 = vor.u32 %v333_v30, %v332_v37  ;;  %v337_v48 = vrot.slane %v332_v37, 4  ;;  %v1432_v61 = vld [vmem:[#allocation7 + $0x90] sm:$0xff]  ;;  %v1423_v4 = vld [vmem:[#allocation7 + $0x48] sm:$0xff]  ;;  %v1414_v7 = vld [vmem:[#allocation7] sm:$0xff]  ;;  %s1679_s7 = sshra.s32 %s1108_s26, 4  ;;  %s1680_s7 = int_to_ptr.hbm [resolvable:$true] %s1679_s7 }
  0x3e   : > { %644 = vmatpush.bf16.msra.mxu0 %v1418_v11  ;;  %v344_v50 = vor.u32 %v342_v33, %v341_v41  ;;  %v345_v51 = vrot.slane %v341_v41, 4  ;;  %v349_v52 = vrot.slane %v347_v42, 7  ;;  %v363_v55 = vld [vmem:[#allocation2] sm:$0xf]  ;;  %v1431_v6 = vld [vmem:[#allocation7 + $0x88] sm:$0xff]  ;;  %v1422_v11 = vld [vmem:[#allocation7 + $0x40] sm:$0xff]  ;;  %p1686_p11 = scmp.lt.s32.totalorder %s1680_s7, %s2033_s5 }
  0x3f   : > { %663 = vmatpush.bf16.msra.mxu1 %v1426_v12  ;;  %v336_v54 = vsel %vm1927_vm7, %v328_v46, %v335_v47  ;;  %v364_v57 = vsel %vm1933_vm8, %v327_v45, %v363_v55  ;;  %v1430_v16 = vld [vmem:[#allocation7 + $0x80] sm:$0xff]  ;;  %v1444_v55 = vld [vmem:[#allocation9 + $0x30] sm:$0xff]  ;;  %s1681_s13 = scalar_lea.hbm %s1680_s7, 32  ;;  %s1685_s24 = scalar_lea.hbm %s2033_s5, 64 }
  0x40   : > { %682 = vmatpush.bf16.msra.mxu2 %v1434_v22  ;;  %366 = vst [vmem:[#allocation2 + $0x4] sm:$0xf] %v336_v54  ;;  %v367_v58 = vld [vmem:[#allocation2 + $0x8] sm:$0x1]  ;;  %v352_v59 = vor.u32 %v350_v43, %v349_v52  ;;  %v354_v60 = vrot.slane %v349_v52, 4  ;;  %v1446_v10 = vld [vmem:[#allocation9 + $0x40] sm:$0xff]  ;;  %p1682_p1 = scmp.ne.s32.totalorder %s1680_s7, %s1681_s13  ;;  %p1687_p2 = scmp.lt.s32.totalorder %s1685_s24, %s1681_s13 }
  0x41   : > { %365 = vst [vmem:[#allocation2] sm:$0xf] %v364_v57  ;;  %v368_v62 = vsel %vm1888_vm3, %v337_v48, %v367_v58  ;;  %v370_v63 = vld [vmem:[#allocation2 + $0xc] sm:$0xf]  ;;  %v1443_v57 = vld [vmem:[#allocation9 + $0x28] sm:$0xff] }
  0x42   : > { %645 = vmatpush.bf16.msra.mxu0 %v1417_v35  ;;  %369 = vst [vmem:[#allocation2 + $0x8] sm:$0x1] %v368_v62  ;;  %v353_v0 = vsel %vm1927_vm7, %v345_v51, %v352_v59  ;;  %v371_v1 = vsel %vm1933_vm8, %v344_v50, %v370_v63  ;;  %v374_v2 = vld [vmem:[#allocation2 + $0x14] sm:$0x1]  ;;  %v1445_v52 = vld [vmem:[#allocation9 + $0x38] sm:$0xff]  ;;  %v1460_v59 = vld [vmem:[#allocation9 + $0xb0] sm:$0xff]  ;;  %p1683_p4 = pnand %p1682_p1, %p1841_p3  ;;  %p1688_p9 = por %p1687_p2, %p1686_p11 }
  0x43   : > { %664 = vmatpush.bf16.msra.mxu1 %v1425_v39  ;;  %372 = vst [vmem:[#allocation2 + $0xc] sm:$0xf] %v371_v1  ;;  %v375_v5 = vsel %vm1888_vm3, %v354_v60, %v374_v2  ;;  %1022 = vmatpush.bf16.msra.mxu3 %v1445_v52  ;;  %v1453_v58 = vld [vmem:[#allocation9 + $0x78] sm:$0xff]  ;;  %v1442_v60 = vld [vmem:[#allocation9 + $0x20] sm:$0xff]  ;;  %v305_v62 = vld [vmem:[#allocation3 + $0x8] sm:$0x1] }
  0x44   : > { %683 = vmatpush.bf16.msra.mxu2 %v1433_v44  ;;  %373 = vst [vmem:[#allocation2 + $0x10] sm:$0xf] %v353_v0  ;;  %v306_v63 = vsel %vm1893_vm4, 0, %v305_v62  ;;  %v1459_v0 = vld [vmem:[#allocation9 + $0xa8] sm:$0xff]  ;;  %v1441_v1 = vld [vmem:[#allocation9 + $0x18] sm:$0xff]  ;;  %p1684_p8 = pneg %p1683_p4 }
  0x45   : > { %376 = vst [vmem:[#allocation2 + $0x14] sm:$0x1] %v375_v5  ;;  %v1451_v2 = vld [vmem:[#allocation9 + $0x68] sm:$0xff]  ;;  %v1450_v5 = vld [vmem:[#allocation9 + $0x60] sm:$0xff] }
  0x46   : > { %646 = vmatpush.bf16.msra.mxu0 %v1416_v53  ;;  %v299_v53 = vld [vmem:[#allocation3] sm:$0x1]  ;;  %307 = vst [vmem:[#allocation3 + $0x8] sm:$0x1] %v306_v63  ;;  %p1689_p10 = pnand %p1688_p9, %p1684_p8 }
  0x47   : > { %665 = vmatpush.bf16.msra.mxu1 %v1424_v56  ;;  %v1472_v9 = vld [vmem:[#allocation2] sm:$0xf0]  ;;  %v300_v54 = vsel %vm1888_vm3, 0, %v299_v53  ;;  %1023 = vmatpush.bf16.msra.mxu3 %v1444_v55  ;;  %v1461_v56 = vld [vmem:[#allocation9 + $0xb8] sm:$0xff] }
  0x48   : > { %684 = vmatpush.bf16.msra.mxu2 %v1432_v61  ;;  %v1465_v12 = vld [vmem:[#allocation2] sm:$0xff]   ;;  %301 = vst [vmem:[#allocation3] sm:$0x1] %v300_v54 }
  0x49   : > { %v1473_v13 = vld [vmem:[#allocation2] sm:$0xe]  ;;  %v407_v17 = vshll.u32 %v1465_v12, 16  ;;  %v381_v18 = vld [vmem:[#allocation2 + $0x8] sm:$0x1]  ;;  %v405_v20 = vshrl.u32 %v1465_v12, 16 }
  0x4a   : > { %647 = vmatpush.bf16.msra.mxu0 %v1415_v3  ;;  %v1474_v19 = vor.u32 %v1473_v13, %v1472_v9  ;;  %v399_v22 = vunpack.c.l.b16 %v381_v18  ;;  %v1570_v33 = vld [vmem:[#allocation2 + $0xc] sm:$0xe]  ;;  %v1452_v61 = vld [vmem:[#allocation9 + $0x70] sm:$0xff]  ;;  %v1458_v3 = vld [vmem:[#allocation9 + $0xa0] sm:$0xff] }
  0x4b   : > { %666 = vmatpush.bf16.msra.mxu1 %v1423_v4  ;;  %v409_v23 = vrot.slane %v407_v17, 1  ;;  %v379_v24 = vld [vmem:[#allocation2 + $0xc] sm:$0xff]   ;;  %1024 = vmatpush.bf16.msra.mxu3 %v1443_v57  ;;  %v1440_v4 = vld [vmem:[#allocation9 + $0x10] sm:$0xff] }
  0x4c   : > { %685 = vmatpush.bf16.msra.mxu2 %v1431_v6  ;;  %v1569_v26 = vld [vmem:[#allocation2 + $0xc] sm:$0xf0]  ;;  %v401_v27 = vpack.c.b16 %v399_v22, %v399_v22  ;;  %v437_v28 = vrot.slane %v1474_v19, 1  ;;  %v382_v29 = vld [vmem:[#allocation2 + $0x14] sm:$0x1]  ;;  %v419_v39 = vshll.u32 %v379_v24, 16 }
  0x4d   : > { %v410_v30 = vor.u32 %v409_v23, %v405_v20  ;;  %v400_v36 = vunpack.c.l.b16 %v382_v29  ;;  %v1571_v41 = vor.u32 %v1570_v33, %v1569_v26  ;;  %v417_v42 = vshrl.u32 %v379_v24, 16  ;;  %v1960_v6 = vld [vmem:[%s2030_s2] ss:$0 sm:$0xff]  ;;  %v1438_v19 = vld [vmem:[#allocation9] sm:$0xff] }
  0x4e   : > { %648 = vmatpush.bf16.msra.mxu0 %v1414_v7  ;;  %v412_v31 = vshll.u32 %v401_v27, 16  ;;  %v438_v32 = vrot.slane %v401_v27, 1  ;;  %v421_v43 = vrot.slane %v419_v39, 1  ;;  %v302_v7 = vld [vmem:[#allocation3 + $0xc] sm:$0x1]  ;;  %v1455_v27 = vld [vmem:[#allocation9 + $0x88] sm:$0xff] }
  0x4f   : > { %667 = vmatpush.bf16.msra.mxu1 %v1422_v11  ;;  %v402_v38 = vpack.c.b16 %v400_v36, %v400_v36  ;;  %v440_v45 = vrot.slane %v1571_v41, 1  ;;  %1025 = vmatpush.bf16.msra.mxu3 %v1442_v60  ;;  %v303_v9 = vsel %vm1888_vm3, 0, %v302_v7  ;;  %v1457_v11 = vld [vmem:[#allocation9 + $0x98] sm:$0xff]  ;;  %v1456_v18 = vld [vmem:[#allocation9 + $0x90] sm:$0xff] }
  0x50   : > { %686 = vmatpush.bf16.msra.mxu2 %v1430_v16  ;;  %v414_v34 = vrot.slane %v412_v31, 1  ;;  %v439_v35 = vsel %vm436_vm9, %v437_v28, %v438_v32  ;;  %v422_v47 = vor.u32 %v421_v43, %v417_v42  ;;  %304 = vst [vmem:[#allocation3 + $0xc] sm:$0x1] %v303_v9  ;;  %v1449_v16 = vld [vmem:[#allocation9 + $0x58] sm:$0xff]  ;;  %v1448_v22 = vld [vmem:[#allocation9 + $0x50] sm:$0xff]  ;;  %v1454_v32 = vld [vmem:[#allocation9 + $0x80] sm:$0xff] }
  0x51   : > { %649 = vmatmul.bf16.vlgmr.msra.gmra.mxu0 %v1465_v12  ;;  %v424_v44 = vshll.u32 %v402_v38, 16  ;;  %v441_v46 = vrot.slane %v402_v38, 1  ;;  %v1439_v12 = vld [vmem:[#allocation9 + $0x8] sm:$0xff] }
  0x52   : > { %v415_v37 = vsel %vm403_vm10, %v410_v30, %v414_v34  ;;  %1041 = vmatpush.bf16.msrb.mxu0 %v1453_v58  ;;  %v1447_v30 = vld [vmem:[#allocation9 + $0x48] sm:$0xff] }
  0x53   : > { %687 = vmatmul.bf16.vlgmr.msra.gmra.mxu2 %v439_v35  ;;  %668 = vmatmul.bf16.vlgmr.msra.gmra.mxu1 %v415_v37  ;;  %v426_v48 = vrot.slane %v424_v44, 1  ;;  %v442_v50 = vsel %vm436_vm9, %v440_v45, %v441_v46  ;;  %v746_v46 = vld [vmem:[#allocation3] sm:$0xf] }
  0x54   : > { %1060 = vmatpush.bf16.msrb.mxu1 %v1461_v56  ;;  %1478 = vmatpush.bf16.msrb.mxu2 %v1453_v58 }
  0x55   : > { %v427_v51 = vsel %vm403_vm10, %v422_v47, %v426_v48  ;;  %1026 = vmatpush.bf16.msra.mxu3 %v1441_v1 }
  0x56   : > { %1042 = vmatpush.bf16.msrb.mxu0 %v1452_v61 }
  0x58   : > { %1061 = vmatpush.bf16.msrb.mxu1 %v1460_v59  ;;  %1479 = vmatpush.bf16.msrb.mxu2 %v1452_v61  ;;  %v750_v61 = vld [vmem:[#allocation3 + $0x8] sm:$0x1] }
  0x59   : > { %1027 = vmatpush.bf16.msra.mxu3 %v1440_v4 }
  0x5a   : > { %1043 = vmatpush.bf16.msrb.mxu0 %v1451_v2 }
  0x5c   : > { %1062 = vmatpush.bf16.msrb.mxu1 %v1459_v0  ;;  %1480 = vmatpush.bf16.msrb.mxu2 %v1451_v2 }
  0x5d   : > { %1028 = vmatpush.bf16.msra.mxu3 %v1439_v12 }
  0x5e   : > { %1044 = vmatpush.bf16.msrb.mxu0 %v1450_v5 }
  0x60   : > { %1063 = vmatpush.bf16.msrb.mxu1 %v1458_v3  ;;  %1481 = vmatpush.bf16.msrb.mxu2 %v1450_v5 }
  0x61   : > { %654 = vmatmul.bf16.gmra.mxu0 %v379_v24  ;;  %v308_v24 = vld [vmem:[#allocation3 + $0x14] sm:$0x1]  ;;  %1029 = vmatpush.bf16.msra.mxu3 %v1438_v19 }
  0x62   : > { %1045 = vmatpush.bf16.msrb.mxu0 %v1449_v16  ;;  %v309_v26 = vsel %vm1893_vm4, 0, %v308_v24 }
  0x63   : > { %692 = vmatmul.bf16.gmra.mxu2 %v442_v50  ;;  %673 = vmatmul.bf16.gmra.mxu1 %v427_v51  ;;  %310 = vst [vmem:[#allocation3 + $0x14] sm:$0x1] %v309_v26 }
  0x64   : > { %1064 = vmatpush.bf16.msrb.mxu1 %v1457_v11  ;;  %1482 = vmatpush.bf16.msrb.mxu2 %v1449_v16 }
  0x65   : > { %1486 = vmatpush.bf16.msrb.mxu3 %v1461_v56 }
  0x66   : > { %1046 = vmatpush.bf16.msrb.mxu0 %v1448_v22 }
  0x68   : > { %1065 = vmatpush.bf16.msrb.mxu1 %v1456_v18  ;;  %1483 = vmatpush.bf16.msrb.mxu2 %v1448_v22 }
  0x69   : > { %1487 = vmatpush.bf16.msrb.mxu3 %v1460_v59 }
  0x6a   : > { %1047 = vmatpush.bf16.msrb.mxu0 %v1447_v30 }
  0x6c   : > { %1066 = vmatpush.bf16.msrb.mxu1 %v1455_v27  ;;  %1484 = vmatpush.bf16.msrb.mxu2 %v1447_v30 }
  0x6d   : > { %1488 = vmatpush.bf16.msrb.mxu3 %v1459_v0 }
  0x6e   : > { %1048 = vmatpush.bf16.msrb.mxu0 %v1446_v10 }
  0x70   : > { %1067 = vmatpush.bf16.msrb.mxu1 %v1454_v32  ;;  %1485 = vmatpush.bf16.msrb.mxu2 %v1446_v10  ;;  %v757_v10 = vld [vmem:[#allocation3 + $0x14] sm:$0x1] }
  0x71   : > { %1489 = vmatpush.bf16.msrb.mxu3 %v1458_v3 }
  0x75   : > { %1490 = vmatpush.bf16.msrb.mxu3 %v1457_v11 }
  0x79   : > { %1491 = vmatpush.bf16.msrb.mxu3 %v1456_v18 }
  0x7d   : > { %1492 = vmatpush.bf16.msrb.mxu3 %v1455_v27 }
  0x81   : > { %1493 = vmatpush.bf16.msrb.mxu3 %v1454_v32 }
  0xce   : > { %v650_v13 = vpop.f32.mrf.mxu0 }
  0xcf   : > { %v651_v17 = vadd.f32 %v1960_v6, %v650_v13 }
  0xd0   : > { %v669_v20 = vpop.f32.mrf.mxu1 }
  0xd1   : > { %v670_v23 = vadd.f32 %v669_v20, %v651_v17  ;;  %v753_v17 = vld [vmem:[#allocation3 + $0xc] sm:$0xf] }
  0xd6   : > { %v688_v28 = vpop.f32.mrf.mxu2  ;;  %v652_v29 = vpop.f32.mrf.mxu0 }
  0xd7   : > { %v689_v31 = vadd.f32 %v688_v28, %v670_v23  ;;  %v653_v34 = vadd.f32 %v1960_v6, %v652_v29 }
  0xd8   : > { %v671_v35 = vpop.f32.mrf.mxu1 }
  0xd9   : > { %v698_v33 = vmax.f32 %v689_v31, 0.0  ;;  %v672_v38 = vadd.f32 %v671_v35, %v653_v34 }
  0xdb   : > { %v702_v36 = vpack.c.bf16 %v698_v33, %v698_v33 }
  0xdd   : > { %v707_v37 = vshrl.u32 %v702_v36, 16  ;;  %v710_v43 = vshll.u32 %v702_v36, 16 }
  0xde   : > { %v690_v39 = vpop.f32.mrf.mxu2  ;;  %v655_v41 = vpop.f32.mrf.mxu0 }
  0xdf   : > { %v709_v42 = vrot.slane %v707_v37, 7  ;;  %v691_v44 = vadd.f32 %v690_v39, %v672_v38  ;;  %v656_v45 = vadd.f32 %v1960_v6, %v655_v41 }
  0xe0   : > { %v674_v50 = vpop.f32.mrf.mxu1 }
  0xe1   : > { %v712_v47 = vor.u32 %v710_v43, %v709_v42  ;;  %v699_v48 = vmax.f32 %v691_v44, 0.0  ;;  %v675_v53 = vadd.f32 %v674_v50, %v656_v45  ;;  %v713_v60 = vrot.slane %v709_v42, 4 }
  0xe3   : > { %v747_v51 = vsel %vm1933_vm8, %v712_v47, %v746_v46  ;;  %v703_v52 = vpack.c.bf16 %v699_v48, %v699_v48 }
  0xe4   : > { %748 = vst [vmem:[#allocation3] sm:$0xf] %v747_v51 }
  0xe5   : > { %v715_v54 = vshrl.u32 %v703_v52, 16  ;;  %v718_v58 = vshll.u32 %v703_v52, 16 }
  0xe6   : > { %v693_v55 = vpop.f32.mrf.mxu2  ;;  %v657_v56 = vpop.f32.mrf.mxu0 }
  0xe7   : > { %v717_v57 = vrot.slane %v715_v54, 7  ;;  %v694_v59 = vadd.f32 %v693_v55, %v675_v53  ;;  %v658_v1 = vadd.f32 %v1960_v6, %v657_v56 }
  0xe8   : > { %v676_v5 = vpop.f32.mrf.mxu1 }
  0xe9   : > { %v720_v62 = vor.u32 %v718_v58, %v717_v57  ;;  %v722_v63 = vrot.slane %v717_v57, 4  ;;  %v700_v0 = vmax.f32 %v694_v59, 0.0  ;;  %v677_v9 = vadd.f32 %v676_v5, %v658_v1 }
  0xeb   : > { %v721_v2 = vsel %vm1927_vm7, %v713_v60, %v720_v62  ;;  %v751_v3 = vsel %vm1888_vm3, %v722_v63, %v750_v61  ;;  %v704_v4 = vpack.c.bf16 %v700_v0, %v700_v0  ;;  %v1476_v24 = vld [vmem:[#allocation3] sm:$0xe]  ;;  %v1568_v0 = vld [vmem:[%s2032_s4] ss:$0 sm:$0xff] }
  0xec   : > { %749 = vst [vmem:[#allocation3 + $0x4] sm:$0xf] %v721_v2 }
  0xed   : > { %752 = vst [vmem:[#allocation3 + $0x8] sm:$0x1] %v751_v3  ;;  %v724_v7 = vshrl.u32 %v704_v4, 16  ;;  %v727_v13 = vshll.u32 %v704_v4, 16 }
  0xee   : > { %v695_v11 = vpop.f32.mrf.mxu2 }
  0xef   : > { %v726_v12 = vrot.slane %v724_v7, 7  ;;  %v696_v16 = vadd.f32 %v695_v11, %v677_v9 }
  0xf1   : > { %v729_v6 = vor.u32 %v727_v13, %v726_v12  ;;  %v701_v18 = vmax.f32 %v696_v16, 0.0  ;;  %v730_v35 = vrot.slane %v726_v12, 4 }
  0xf3   : > { %v754_v19 = vsel %vm1933_vm8, %v729_v6, %v753_v17  ;;  %v705_v20 = vpack.c.bf16 %v701_v18, %v701_v18  ;;  %v1469_v22 = vld [vmem:[#allocation3] sm:$0xff]  }
  0xf4   : > { %v1475_v23 = vld [vmem:[#allocation3] sm:$0xf0]  ;;  %755 = vst [vmem:[#allocation3 + $0xc] sm:$0xf] %v754_v19  ;;  %v789_v26 = vshll.u32 %v1469_v22, 16  ;;  %1030 = vmatmul.bf16.vlgmr.msra.gmra.mxu3 %v1469_v22  ;;  %v787_v36 = vshrl.u32 %v1469_v22, 16 }
  0xf5   : > { %v764_v27 = vld [vmem:[#allocation3 + $0x8] sm:$0x1]  ;;  %v1477_v28 = vor.u32 %v1476_v24, %v1475_v23  ;;  %v732_v29 = vshrl.u32 %v705_v20, 16  ;;  %v735_v34 = vshll.u32 %v705_v20, 16 }
  0xf6   : > { %v782_v30 = vunpack.c.l.b16 %v764_v27  ;;  %v791_v31 = vrot.slane %v789_v26, 1 }
  0xf7   : > { %v734_v33 = vrot.slane %v732_v29, 7  ;;  %v818_v49 = vrot.slane %v1477_v28, 1 }
  0xf8   : > { %v784_v32 = vpack.c.b16 %v782_v30, %v782_v30  ;;  %v792_v42 = vor.u32 %v791_v31, %v787_v36 }
  0xf9   : > { %v737_v37 = vor.u32 %v735_v34, %v734_v33  ;;  %v739_v38 = vrot.slane %v734_v33, 4 }
  0xfa   : > { %v819_v39 = vrot.slane %v784_v32, 1  ;;  %v794_v41 = vshll.u32 %v784_v32, 16 }
  0xfb   : > { %v738_v43 = vsel %vm1927_vm7, %v730_v35, %v737_v37  ;;  %v758_v44 = vsel %vm1888_vm3, %v739_v38, %v757_v10  ;;  %v1573_v56 = vld [vmem:[#allocation3 + $0xc] sm:$0xe] }
  0xfc   : > { %v820_v45 = vsel %vm436_vm9, %v818_v49, %v819_v39  ;;  %v796_v46 = vrot.slane %v794_v41, 1  ;;  %756 = vst [vmem:[#allocation3 + $0x10] sm:$0xf] %v738_v43 }
  0xfd   : > { %1068 = vmatmul.bf16.vlgmr.msrb.gmra.mxu1 %v820_v45  ;;  %759 = vst [vmem:[#allocation3 + $0x14] sm:$0x1] %v758_v44 }
  0xfe   : > { %v797_v47 = vsel %vm403_vm10, %v792_v42, %v796_v46 }
  0xff   : > { %1049 = vmatmul.bf16.vlgmr.msrb.gmra.mxu0 %v797_v47 }
 0x103   : > { %v762_v48 = vld [vmem:[#allocation3 + $0xc] sm:$0xff]  }
 0x104   : > { %v1572_v50 = vld [vmem:[#allocation3 + $0xc] sm:$0xf0]  ;;  %v765_v51 = vld [vmem:[#allocation3 + $0x14] sm:$0x1]  ;;  %v801_v54 = vshll.u32 %v762_v48, 16  ;;  %1035 = vmatmul.bf16.gmra.mxu3 %v762_v48  ;;  %v799_v55 = vshrl.u32 %v762_v48, 16 }
 0x105   : > { %v783_v52 = vunpack.c.l.b16 %v765_v51  ;;  %v1574_v60 = vor.u32 %v1573_v56, %v1572_v50 }
 0x106   : > { %v803_v8 = vrot.slane %v801_v54, 1 }
 0x107   : > { %v785_v53 = vpack.c.b16 %v783_v52, %v783_v52  ;;  %v821_v61 = vrot.slane %v1574_v60, 1 }
 0x108   : > { %v804_v57 = vor.u32 %v803_v8, %v799_v55 }
 0x109   : > { %v806_v40 = vshll.u32 %v785_v53, 16  ;;  %v822_v62 = vrot.slane %v785_v53, 1 }
 0x10b   : > { %v808_v58 = vrot.slane %v806_v40, 1  ;;  %v823_v63 = vsel %vm436_vm9, %v821_v61, %v822_v62 }
 0x10d   : > { %v809_v59 = vsel %vm403_vm10, %v804_v57, %v808_v58 }
 0x10e   : > { %1054 = vmatmul.bf16.vlgmr.msrb.gmra.mxu2 %v809_v59 }
 0x114   : > { %1073 = vmatmul.bf16.vlgmr.msrb.gmra.mxu3 %v823_v63 }
 0x177   : > { %v1031_v1 = vpop.f32.mrf.mxu3 }
 0x178   : > { %v1032_v2 = vadd.f32 %v1568_v0, %v1031_v1 }
 0x17a   : > { %v1069_v3 = vpop.f32.mrf.mxu1 }
 0x17c   : > { %v1050_v4 = vpop.f32.mrf.mxu0 }
 0x17d   : > { %v1051_v5 = vadd.f32 %v1050_v4, %v1032_v2 }
 0x17f   : > { %v1070_v7 = vadd.f32 %v1069_v3, %v1051_v5  ;;  %v1033_v9 = vpop.f32.mrf.mxu3 }
 0x180   : > { %v1034_v12 = vadd.f32 %v1568_v0, %v1033_v9 }
 0x181   : > { %v1083_v11 = vadd.f32 %v1070_v7, %v1898_v14 }
 0x182   : > { %v1071_v17 = vpop.f32.mrf.mxu1 }
 0x183   : > { %1087 = vst [vmem:[%s278_s11] sm:$0xff] %v1083_v11 }
 0x184   : > { %v1052_v13 = vpop.f32.mrf.mxu0 }
 0x185   : > { %v1053_v16 = vadd.f32 %v1052_v13, %v1034_v12 }
 0x187   : > { %v1072_v6 = vadd.f32 %v1071_v17, %v1053_v16  ;;  %v1036_v19 = vpop.f32.mrf.mxu3 }
 0x188   : > { %v1037_v23 = vadd.f32 %v1568_v0, %v1036_v19 }
 0x189   : > { %v1084_v18 = vadd.f32 %v1072_v6, %v1901_v15 }
 0x18b   : > { %1088 = vst [vmem:[%s278_s11 + $0x8] sm:$0xff] %v1084_v18 }
 0x18f   : > { %v1038_v20 = vpop.f32.mrf.mxu3 }
 0x190   : > { %v1039_v29 = vadd.f32 %v1568_v0, %v1038_v20 }
 0x191   : > { %v1055_v22 = vpop.f32.mrf.mxu2 }
 0x192   : > { %v1056_v24 = vadd.f32 %v1055_v22, %v1037_v23 }
 0x197   : > { %v1074_v26 = vpop.f32.mrf.mxu3 }
 0x198   : > { %v1075_v27 = vadd.f32 %v1074_v26, %v1056_v24 }
 0x199   : > { %v1057_v28 = vpop.f32.mrf.mxu2 }
 0x19a   : > { %v1085_v14 = vadd.f32 %v1075_v27, %v1910_v21  ;;  %v1058_v15 = vadd.f32 %v1057_v28, %v1039_v29 }
 0x19c   : > { %1089 = vst [vmem:[%s278_s11 + $0x10] sm:$0xff] %v1085_v14 }
 0x19f   : > { %v1076_v30 = vpop.f32.mrf.mxu3 }
 0x1a0   : > { %v1077_v31 = vadd.f32 %v1076_v30, %v1058_v15 }
 0x1a2   : > { %v1086_v33 = vadd.f32 %v1077_v31, %v1917_v25 }
 0x1a4   : > { %1090 = vst [vmem:[%s278_s11 + $0x18] sm:$0xff] %v1086_v33 }
 0x1a5   : > { %1692 = shalt.err (!%p1689_p10)
}
 0x1a6   : > { %s1743_s8 = smov 128   ;;  %s1744_s10 = smov 8  }
 0x1a7   : > { %1504 = dma.vmem_to_hbm [thread:$0]  (%p1841_p3), %s1106_s6, 512, %s1108_s26, %s1092_s22, %s1743_s8, %s1743_s8, %s1744_s10  }
 0x1a8 PF: > { %s1122_s11 = sand.u32 1, %s1723_s18   ;;  %p2047_p12 = scmp.ge.s32.totalorder %s1735_s21, 2 }
 0x1a9   : > { %s1123_s12 = scalar_lea.sflag [#allocation6], %s1122_s11 }
 0x1aa   : > { %p1518_p13 = pnand %p2047_p12, %p1810_p6 }
 0x1ac   : > { %p1519_p0 = pneg %p1518_p13 }
 0x1ae   : > { %1718 = dma.done.wait (%p1519_p0), %s1123_s12, 512  }
 0x1af   : > { %1720 = vsyncadd (%p1519_p0), %s1123_s12, 4294966784  ;;  %p19_p5 = scmp.ge.s32.totalorder %s1831_s14, 4   ;;  %s2048_s18 = smov %s1727_s19 }
 0x1b0   : > { %s2049_s19 = smov %s1731_s20  ;;  %s2050_s20 = smov %s1847_s23 }
 0x1b1   : > { %s2051_s21 = smov %s1831_s14  ;;  %21 = sbr.rel (!%p19_p5) target bundleno = 6 (0x6), region = 93 }
 0x1b6   :  { %1129 = vsyncpa [#allocation5], 1 }
 0x1b7   :  { %1131 = vsyncpa [#allocation5 + $0x1], 1 }
 0x1b8   :  { %1132 = vsyncpa [#allocation8], 1 }
 0x1b9   :  { %1133 = vsyncpa [#allocation6], 1 }
 0x1ba   :  { %1135 = vsyncpa [#allocation6 + $0x1], 1 }

</bundles_post_ra>
